<compile_context>
chip_gen: v6e
topology: v6e:2x2x1
jax: 0.10.0
libtpu: 0.0.40
codegen_flags: <defaults>
</compile_context>

<pallas_src>
import functools
import math

import jax
import jax.numpy as jnp
from jax.experimental import pallas as pl
from jax.experimental.pallas import tpu as pltpu


def _round_up(x: int, m: int) -> int:
    return ((x + m - 1) // m) * m


def _sinusoidal_kernel(x_ref, freq_ref, phase_ref, out_ref, *, group: int, dim: int):
    # x_ref:     (T, group)      f32  `group` timesteps packed per physical row
    # freq_ref:  (1, group*dim)  f32  tiled [f_0..f_{h-1}, f_0..f_{h-1}] x group
    # phase_ref: (1, group*dim)  f32  0.0 on sin lanes, pi/2 on cos lanes
    # out_ref:   (T, group*dim)  f32
    x = x_ref[...]
    t = x.shape[0]
    if group == 1:
        xe = x  # (T, 1) -> broadcasts against the (1, dim) tables below
    else:
        parts = [jnp.broadcast_to(x[:, k:k + 1], (t, dim)) for k in range(group)]
        xe = jnp.concatenate(parts, axis=-1)  # (T, group*dim)
    # cos(a) = sin(a + pi/2): one transcendental per output element.
    out_ref[...] = jnp.sin(xe * freq_ref[...] + phase_ref[...])


def sinusoidal_pos_emb(x: jax.Array, dim: int, *, tile_rows: int = 1024) -> jax.Array:
    """Pallas equivalent of SinusoidalPosEmb(dim)(x). Requires even dim >= 4."""
    if dim % 2 != 0 or dim < 4:
        raise ValueError("SinusoidalPosEmb kernel requires an even dim >= 4.")
    half_dim = dim // 2
    log_scale = math.log(10000.0) / (half_dim - 1)
    freqs = jnp.exp(jnp.arange(half_dim, dtype=jnp.float32) * -log_scale)  # (h,)

    orig_shape = x.shape
    xf = x.astype(jnp.float32).reshape(-1)
    n = xf.shape[0]

    # Lane packing factor: `group` logical rows per 128-lane physical row.
    group = 128 // dim if (dim < 128 and 128 % dim == 0) else 1
    width = group * dim

    # Host-precomputed tables (constant across grid steps).
    base_freq = jnp.concatenate([freqs, freqs])                                # (dim,)
    base_phase = jnp.concatenate([jnp.zeros((half_dim,), jnp.float32),
                                  jnp.full((half_dim,), 0.5 * math.pi, jnp.float32)])
    freq_row = jnp.tile(base_freq, group).reshape(1, width)
    phase_row = jnp.tile(base_phase, group).reshape(1, width)

    # Tile height: multiple of 8 sublanes, block bytes capped ~2 MiB (v7x-safe).
    rows = -(-n // group)  # packed rows needed
    rows_cap = max(8, ((2 * 1024 * 1024) // (width * 4)) // 8 * 8)
    t = min(_round_up(tile_rows, 8), _round_up(rows, 8), rows_cap)
    rows_padded = _round_up(rows, t)
    n_padded = rows_padded * group
    if n_padded != n:
        xf = jnp.pad(xf, (0, n_padded - n))
    x_packed = xf.reshape(rows_padded, group)

    out = pl.pallas_call(
        functools.partial(_sinusoidal_kernel, group=group, dim=dim),
        out_shape=jax.ShapeDtypeStruct((rows_padded, width), jnp.float32),
        grid=(rows_padded // t,),
        in_specs=[
            pl.BlockSpec((t, group), lambda i: (i, 0)),
            pl.BlockSpec((1, width), lambda i: (0, 0)),
            pl.BlockSpec((1, width), lambda i: (0, 0)),
        ],
        out_specs=pl.BlockSpec((t, width), lambda i: (i, 0)),
        compiler_params=pltpu.CompilerParams(
            dimension_semantics=("parallel",),
        ),
    )(x_packed, freq_row, phase_row)

    out = out.reshape(rows_padded * group, dim)[:n]
    return out.reshape(*orig_shape, dim)


def _reference(x: jax.Array, dim: int) -> jax.Array:
    half_dim = dim // 2
    emb = math.log(10000.0) / (half_dim - 1)
    emb = jnp.exp(jnp.arange(half_dim, dtype=jnp.float32) * -emb)
    if x.ndim == 2:
        e = x[..., None] * emb
    else:
        e = x[:, None] * emb[None, :]
    return jnp.concatenate([jnp.sin(e), jnp.cos(e)], axis=-1)


if __name__ == "__main__":
    key = jax.random.PRNGKey(0)
    k1, k2, k3, k4 = jax.random.split(key, 4)
    dim = 32

    # 1-D timestep input (the common diffusion use case).
    x1 = jax.random.uniform(k1, (8,), dtype=jnp.float32) * 100.0
    out1 = jax.block_until_ready(sinusoidal_pos_emb(x1, dim))
    ref1 = _reference(x1, dim)
    assert out1.shape == (8, dim)
    assert jnp.allclose(out1, ref1, atol=5e-5, rtol=1e-5)

    # 2-D branch (x.dim() == 2 in the PyTorch module).
    x2 = jax.random.uniform(k2, (2, 4), dtype=jnp.float32) * 100.0
    out2 = jax.block_until_ready(sinusoidal_pos_emb(x2, dim))
    ref2 = _reference(x2, dim)
    assert out2.shape == (2, 4, dim)
    assert jnp.allclose(out2, ref2, atol=5e-5, rtol=1e-5)

    # Larger ragged N with a small tile: exercises multi-step grid, padding,
    # and lane packing (group = 128 // 32 = 4).
    x3 = jax.random.uniform(k3, (1000,), dtype=jnp.float32) * 100.0
    out3 = jax.block_until_ready(sinusoidal_pos_emb(x3, dim, tile_rows=64))
    ref3 = _reference(x3, dim)
    assert out3.shape == (1000, dim)
    assert jnp.allclose(out3, ref3, atol=5e-5, rtol=1e-5)

    # dim >= 128 path (already lane-dense, no packing).
    x4 = jax.random.uniform(k4, (16,), dtype=jnp.float32) * 100.0
    out4 = jax.block_until_ready(sinusoidal_pos_emb(x4, 256))
    ref4 = _reference(x4, 256)
    assert out4.shape == (16, 256)
    assert jnp.allclose(out4, ref4, atol=5e-5, rtol=1e-5)

    print("KERNEL_OK")
</pallas_src>

<mosaic_0001>
module attributes {stable_mosaic.version = 11 : i64} {
  func.func @_sinusoidal_kernel(%arg0: i32, %arg1: memref<8x4xf32, #tpu.memory_space<vmem>>, %arg2: memref<1x128xf32, #tpu.memory_space<vmem>>, %arg3: memref<1x128xf32, #tpu.memory_space<vmem>>, %arg4: memref<8x128xf32, #tpu.memory_space<vmem>>) attributes {dimension_semantics = [#tpu.dimension_semantics<parallel>], iteration_bounds = array<i64: 1>, scalar_prefetch = 0 : i64, scratch_operands = 0 : i64, tpu.core_type = #tpu.core_type<tc>, window_params = [{transform_indices = @transform_0, window_bounds = array<i64: 8, 4>}, {pipeline_mode = #tpu.pipeline_mode<synchronous>, transform_indices = @transform_1, window_bounds = array<i64: 1, 128>}, {pipeline_mode = #tpu.pipeline_mode<synchronous>, transform_indices = @transform_2, window_bounds = array<i64: 1, 128>}, {transform_indices = @transform_3, window_bounds = array<i64: 8, 128>}]} {
    %c0 = arith.constant 0 : index
    %c0_0 = arith.constant 0 : index
    %0 = vector.load %arg1[%c0, %c0_0] : memref<8x4xf32, #tpu.memory_space<vmem>>, vector<8x4xf32>
    %1 = vector.extract_strided_slice %0 {offsets = [0, 0], sizes = [8, 1], strides = [1, 1]} : vector<8x4xf32> to vector<8x1xf32>
    %2 = vector.shape_cast %1 : vector<8x1xf32> to vector<8x1xf32>
    %3 = vector.broadcast %2 : vector<8x1xf32> to vector<8x32xf32>
    %4 = vector.extract_strided_slice %0 {offsets = [0, 1], sizes = [8, 1], strides = [1, 1]} : vector<8x4xf32> to vector<8x1xf32>
    %5 = vector.shape_cast %4 : vector<8x1xf32> to vector<8x1xf32>
    %6 = vector.broadcast %5 : vector<8x1xf32> to vector<8x32xf32>
    %7 = vector.extract_strided_slice %0 {offsets = [0, 2], sizes = [8, 1], strides = [1, 1]} : vector<8x4xf32> to vector<8x1xf32>
    %8 = vector.shape_cast %7 : vector<8x1xf32> to vector<8x1xf32>
    %9 = vector.broadcast %8 : vector<8x1xf32> to vector<8x32xf32>
    %10 = vector.extract_strided_slice %0 {offsets = [0, 3], sizes = [8, 1], strides = [1, 1]} : vector<8x4xf32> to vector<8x1xf32>
    %11 = vector.shape_cast %10 : vector<8x1xf32> to vector<8x1xf32>
    %12 = vector.broadcast %11 : vector<8x1xf32> to vector<8x32xf32>
    %13 = tpu.concatenate %3, %6, %9, %12 in 1 : vector<8x32xf32>, vector<8x32xf32>, vector<8x32xf32>, vector<8x32xf32> -> vector<8x128xf32>
    %c0_1 = arith.constant 0 : index
    %c0_2 = arith.constant 0 : index
    %14 = vector.load %arg2[%c0_1, %c0_2] : memref<1x128xf32, #tpu.memory_space<vmem>>, vector<1x128xf32>
    %15 = vector.broadcast %14 : vector<1x128xf32> to vector<8x128xf32>
    %16 = arith.mulf %13, %15 : vector<8x128xf32>
    %c0_3 = arith.constant 0 : index
    %c0_4 = arith.constant 0 : index
    %17 = vector.load %arg3[%c0_3, %c0_4] : memref<1x128xf32, #tpu.memory_space<vmem>>, vector<1x128xf32>
    %18 = vector.broadcast %17 : vector<1x128xf32> to vector<8x128xf32>
    %19 = arith.addf %16, %18 : vector<8x128xf32>
    %20 = math.sin %19 : vector<8x128xf32>
    %c0_5 = arith.constant 0 : index
    %c0_6 = arith.constant 0 : index
    %21 = vector.load %arg4[%c0_5, %c0_6] : memref<8x128xf32, #tpu.memory_space<vmem>>, vector<8x128xf32>
    tpu.vector_store %arg4[%c0_5, %c0_6], %20 {strides = array<i32>} : memref<8x128xf32, #tpu.memory_space<vmem>>, vector<8x128xf32>,
    return
  }
  func.func @transform_0(%arg0: i32) -> (i32, i32) {
    %c0_i32 = arith.constant 0 : i32
    %c0_i32_0 = arith.constant 0 : i32
    return %arg0, %c0_i32 : i32, i32
  }
  func.func @transform_1(%arg0: i32) -> (i32, i32) {
    %c0_i32 = arith.constant 0 : i32
    %c0_i32_0 = arith.constant 0 : i32
    %c0_i32_1 = arith.constant 0 : i32
    return %c0_i32, %c0_i32_0 : i32, i32
  }
  func.func @transform_2(%arg0: i32) -> (i32, i32) {
    %c0_i32 = arith.constant 0 : i32
    %c0_i32_0 = arith.constant 0 : i32
    %c0_i32_1 = arith.constant 0 : i32
    return %c0_i32, %c0_i32_0 : i32, i32
  }
  func.func @transform_3(%arg0: i32) -> (i32, i32) {
    %c0_i32 = arith.constant 0 : i32
    %c0_i32_0 = arith.constant 0 : i32
    return %arg0, %c0_i32 : i32, i32
  }
}

</mosaic_0001>

<bundles_post_ra>
// kernel: tpu_custom_call.1
= control target key start
LH: loop header
LB: loop body
LE: loop exit
PB: predicated region body
PF: predicated region fallthrough
CT: control target
= control target key end

     0   :  { %v226_v1 = vmov 0   ;;  %v227_v2 = vmov 2   ;;  %s290_s0 = inlined_call_operand.vmem [shape: f32[8,4], index: 0, kind: input, shape index: {}]   ;;  %s291_s1 = inlined_call_operand.vmem [shape: f32[1,128], index: 1, kind: input, shape index: {}]   ;;  %s292_s2 = inlined_call_operand.vmem [shape: f32[1,128], index: 2, kind: input, shape index: {}]   ;;  %s293_s3 = inlined_call_operand.hbm [shape: f32[8,128], index: 3, kind: output, shape index: {}]  }
   0x1   :  { %v15_v0 = vld [vmem:[%s290_s0] sm:$0xff]  ;;  %195 = vset.pattern.permute.xlu0 %v226_v1  ;;  %197 = vset.pattern.permute.xlu1 %v227_v2 }
   0x2   :  { %8 = vsyncpa [#allocation3], 0  ;;  %18 = vperm.xlu0 %195, %v15_v0   ;;  %26 = vperm.xlu1 %197, %v15_v0   ;;  %v228_v3 = vmov 1   ;;  %v229_v4 = vmov 3   ;;  %vm33_vm0 = vcmask 261120   ;;  %vm35_vm1 = vcmask 523264  }
   0x3   :  { %vm37_vm2 = vcmask 785408   ;;  %v174_v10 = vld [vmem:[%s291_s1] ss:$0 sm:$0xff]  ;;  %v230_v26 = vmov 683565275   ;;  %s236_s1 = smov [#allocation2]  }
   0x4   :  { %v175_v12 = vld [vmem:[%s292_s2] ss:$0 sm:$0xff]  ;;  %v231_v28 = vmov 2475754826   ;;  %v232_v31 = vmov 2131351028  }
   0x5   :  { %v233_v34 = vmov 2102212464   ;;  %v234_v37 = vmov 920167782   ;;  %v235_v40 = vmov 1326507024  }
   0x6   :  { %196 = vset.pattern.permute.xlu0 %v228_v3  ;;  %198 = vset.pattern.permute.xlu1 %v229_v4  ;;  %s166_s2 = sshll.u32 %s236_s1, 4  ;;  %s167_s2 = int_to_ptr.vmem [resolvable:$true] %s166_s2 }
   0x7   :  { %22 = vperm.xlu0 %196, %v15_v0   ;;  %30 = vperm.xlu1 %198, %v15_v0   ;;  %s204_s17 = scalar_lea.vmem %s167_s2, 128  ;;  %p209_p1 = scmp.lt.s32.totalorder %s167_s2, %s167_s2 }
   0x8   :  { %p205_p0 = scmp.ne.s32.totalorder %s167_s2, %s204_s17  ;;  %p210_p2 = scmp.lt.s32.totalorder %s204_s17, %s204_s17 }
   0xa   :  { %p211_p3 = por %p210_p2, %p209_p1 }
   0xb   :  { %199 = vset.pattern.permute.xlu0 %v229_v4 }
   0xc   :  { %p212_p4 = pnand %p211_p3, %p205_p0 }
  0x7d   :  { %v19_v5 = vpop.permute.xlu0 %18  ;;  %v27_v6 = vpop.permute.xlu1 %26 }
  0x82   :  { %v23_v7 = vpop.permute.xlu0 %22  ;;  %v31_v8 = vpop.permute.xlu1 %30 }
  0x83   :  { %v34_v9 = vsel %vm33_vm0, %v19_v5, %v23_v7 }
  0x84   :  { %v36_v11 = vsel %vm35_vm1, %v34_v9, %v27_v6 }
  0x85   :  { %v38_v13 = vsel %vm37_vm2, %v36_v11, %v31_v8 }
  0x86   :  { %v46_v14 = vmul.f32 %v174_v10, %v38_v13 }
  0x88   :  { %v266_v15 = vadd.f32 %v175_v12, %v46_v14 }
  0x8a   :  { %v58_v16 = vand.u32 2139095040, %v266_v15  ;;  %v55_v20 = vand.u32 2147483647, %v266_v15  ;;  %vm57_vm10 = vcmp.lt.s32.totalorder %v266_v15, 0  ;;  %vm147_vm15 = vweird.f32 %v266_v15 }
  0x8c   :  { %v59_v17 = vshrl.u32 %v58_v16, 23  ;;  %v62_v24 = vand.u32 8388607, %v55_v20  ;;  %vm56_vm11 = vcmp.le.f32.partialorder %v55_v20, 0.7853982 }
  0x8e   :  { %v176_v18 = vadd.s32 4294967169, %v59_v17  ;;  %v63_v42 = vor.u32 8388608, %v62_v24 }
  0x90   :  { %v65_v19 = vadd.s32 1, %v176_v18  ;;  %v103_v56 = vshll.u32 %v63_v42, 8 }
  0x92   :  { %vm66_vm3 = vcmp.gt.s32.totalorder %v65_v19, 0 }
  0x93   :  { %v67_v21 = vsel %vm66_vm3, %v65_v19, 0 }
  0x94   :  { %v69_v22 = vand.u32 31, %v67_v21  ;;  %v68_v25 = vshrl.u32 %v67_v21, 5 }
  0x96   :  { %v70_v23 = vsub.s32 32, %v69_v22  ;;  %v72_v27 = vshll.u32 %v230_v26, %v69_v22  ;;  %v75_v29 = vshll.u32 %v231_v28, %v69_v22  ;;  %v78_v33 = vshll.u32 %v232_v31, %v69_v22 }
  0x97   :  { %v81_v36 = vshll.u32 %v233_v34, %v69_v22  ;;  %v84_v39 = vshll.u32 %v234_v37, %v69_v22  ;;  %vm87_vm4 = vcmp.lt.s32.totalorder %v68_v25, 1  ;;  %vm90_vm5 = vcmp.lt.s32.totalorder %v68_v25, 4 }
  0x98   :  { %v73_v30 = vshrl.u32 %v231_v28, %v70_v23  ;;  %v76_v32 = vshrl.u32 %v232_v31, %v70_v23  ;;  %v79_v35 = vshrl.u32 %v233_v34, %v70_v23  ;;  %v82_v38 = vshrl.u32 %v234_v37, %v70_v23 }
  0x99   :  { %v85_v41 = vshrl.u32 %v235_v40, %v70_v23  ;;  %v71_v51 = vshrl.u32 %v230_v26, %v70_v23  ;;  %vm89_vm6 = vcmp.lt.s32.totalorder %v68_v25, 3  ;;  %vm88_vm7 = vcmp.lt.s32.totalorder %v68_v25, 2 }
  0x9a   :  { %v74_v43 = vor.u32 %v73_v30, %v72_v27  ;;  %v77_v44 = vor.u32 %v76_v32, %v75_v29  ;;  %v80_v45 = vor.u32 %v79_v35, %v78_v33  ;;  %v83_v46 = vor.u32 %v82_v38, %v81_v36 }
  0x9b   :  { %v86_v47 = vor.u32 %v85_v41, %v84_v39 }
  0x9c   :  { %v92_v48 = vsel %vm90_vm5, %v80_v45, 2102212464  ;;  %v95_v49 = vsel %vm87_vm4, %v74_v43, %v77_v44  ;;  %v99_v50 = vsel %vm87_vm4, %v77_v44, %v80_v45  ;;  %v96_v52 = vsel %vm90_vm5, %v83_v46, 920167782 }
  0x9d   :  { %v100_v53 = vsel %vm90_vm5, %v86_v47, 1326507024  ;;  %v97_v54 = vsel %vm89_vm6, %v80_v45, %v96_v52  ;;  %v91_v57 = vsel %vm87_vm4, %v71_v51, %v74_v43  ;;  %v93_v58 = vsel %vm89_vm6, %v77_v44, %v92_v48 }
  0x9e   :  { %v101_v55 = vsel %vm89_vm6, %v83_v46, %v100_v53  ;;  %v98_v59 = vsel %vm88_vm7, %v95_v49, %v97_v54  ;;  %v94_v1 = vsel %vm88_vm7, %v91_v57, %v93_v58 }
  0x9f   :  { %v102_v60 = vsel %vm88_vm7, %v99_v50, %v101_v55  ;;  %v275_v63 = vmul.u32.u64.low %v103_v56, %v98_v59  ;;  %v276_v0 = vmul.u32.u64.high %v103_v56, %v98_v59, %v275_v63  ;;  %v110_v3 = vmul.u32 %v103_v56, %v94_v1 }
  0xa0   :  { %v272_v61 = vmul.u32.u64.low %v103_v56, %v102_v60  ;;  %v273_v62 = vmul.u32.u64.high %v103_v56, %v102_v60, %v272_v61 }
  0xa1   :  { %v113_v2 = vadd.s32 1, %v276_v0 }
  0xa2   :  { %vm112_vm8 = vc.u32 %v273_v62, %v275_v63  ;;  %v111_v16 = vadd.s32 %v275_v63, %v273_v62 }
  0xa3   :  { %v114_v4 = vsel %vm112_vm8, %v113_v2, %v276_v0 }
  0xa4   :  { %v115_v5 = vadd.s32 %v114_v4, %v110_v3 }
  0xa6   :  { %v116_v6 = vadd.s32 536870912, %v115_v5 }
  0xa8   :  { %v117_v7 = vshrl.u32 %v116_v6, 30 }
  0xaa   :  { %v118_v8 = vshll.u32 %v117_v7, 30  ;;  %v141_v30 = vsub.s32 4, %v117_v7 }
  0xac   :  { %v119_v9 = vsub.s32 %v115_v5, %v118_v8  ;;  %v142_v33 = vsel %vm57_vm10, %v141_v30, %v117_v7 }
  0xad   :  { %v144_v34 = vsel %vm56_vm11, 0, %v142_v33 }
  0xae   :  { %v121_v10 = vsub.s32 0, %v119_v9  ;;  %v148_v35 = vadd.s32 3, %v144_v34 }
  0xb0   :  { %v177_v11 = vmin.u32 %v121_v10, %v119_v9  ;;  %v149_v36 = vand.u32 3, %v148_v35 }
  0xb2   :  { %v123_v12 = vclz %v177_v11  ;;  %vm154_vm12 = vcmp.eq.s32.totalorder %v149_v36, 2  ;;  %vm151_vm13 = vcmp.eq.s32.totalorder %v149_v36, 0  ;;  %vm150_vm14 = vcmp.lt.s32.totalorder %v149_v36, 2 }
  0xb4   :  { %v178_v13 = vadd.s32 4294967294, %v123_v12 }
  0xb6   :  { %vm179_vm9 = vcmp.lt.s32.totalorder %v178_v13, 0 }
  0xb7   :  { %v126_v14 = vsel %vm179_vm9, 0, %v178_v13 }
  0xb8   :  { %v127_v17 = vsub.s32 32, %v126_v14  ;;  %v131_v18 = vsub.s32 4294967266, %v126_v14  ;;  %v128_v19 = vshll.u32 %v119_v9, %v126_v14 }
  0xba   :  { %v129_v21 = vshrl.u32 %v111_v16, %v127_v17  ;;  %v132_v22 = vadd.s32 127, %v131_v18 }
  0xbc   :  { %v130_v23 = vor.u32 %v129_v21, %v128_v19  ;;  %v133_v24 = vshll.u32 %v132_v22, 23 }
  0xbe   :  { %v134_v25 = vor.u32 4788187, %v133_v24  ;;  %v137_v27 = vcvt.s32.f32 %v130_v23 }
  0xc0   :  { %v135_v26 = vand.u32 2147483647, %v134_v25 }
  0xc2   :  { %v138_v28 = vmul.f32 %v137_v27, %v135_v26 }
  0xc4   :  { %v139_v29 = vxor.u32 2147483648, %v138_v28 }
  0xc6   :  { %v140_v31 = vsel %vm57_vm10, %v139_v29, %v138_v28 }
  0xc7   :  { %v143_v32 = vsel %vm56_vm11, %v266_v15, %v140_v31 }
  0xc8   :  { %200 = vcosq.f32 %v143_v32 }
  0xc9   :  { %202 = vsinq.f32 %v143_v32 }
  0xd5   :  { %v201_v37 = vpop.eup %200 }
  0xd6   :  { %v203_v38 = vpop.eup %202  ;;  %v155_v39 = vxor.u32 2147483648, %v201_v37 }
  0xd7   :  { %v152_v40 = vxor.u32 2147483648, %v203_v38 }
  0xd8   :  { %v156_v41 = vsel %vm154_vm12, %v155_v39, %v203_v38 }
  0xd9   :  { %v153_v20 = vsel %vm151_vm13, %v201_v37, %v152_v40 }
  0xda   :  { %v157_v42 = vsel %vm150_vm14, %v153_v20, %v156_v41 }
  0xdb   :  { %v158_v43 = vsel %vm147_vm15, nan, %v157_v42 }
  0xdc   :  { %159 = vst [vmem:[#allocation2] sm:$0xff] %v158_v43 }
  0xdd   :  { %215 = shalt.err (!%p212_p4)
}
  0xde   :  { %169 = dma.vmem_to_hbm [thread:$0]  %s167_s2, 128, %s293_s3, [#allocation3]  }
  0xdf   :  { %224 = dma.done.wait [#allocation3], 128  }
  0xe0   :  { %225 = vsyncadd [#allocation3], 4294967168 }
  0xe1   :  { %173 = vsyncpa [#allocation3], 1 }

</bundles_post_ra>
